<compile_context>
chip_gen: v7x
topology: tpu7x:2x2x1
jax: 0.10.0
libtpu: 0.0.40
codegen_flags: <defaults>
</compile_context>

<pallas_src>
import functools

import numpy as np
import jax
import jax.numpy as jnp
from jax.experimental import pallas as pl
from jax.experimental.pallas import tpu as pltpu


# Tap order matches PyTorch Conv2d weight layout: t = ky*3 + kx, (dy, dx) = (ky-1, kx-1).
_TAPS = tuple((dy, dx) for dy in (-1, 0, 1) for dx in (-1, 0, 1))
_CENTER = 4  # (dy, dx) == (0, 0)


def _edge_masks_np(h, w, hw_pad):
    """(9, hw_pad) f32 validity masks for the 9 zero-padded 3x3 taps of one image.

    Padded lanes [h*w, hw_pad) are 0 so they never contribute (their outputs are
    cropped by the wrapper anyway)."""
    hw = h * w
    ys, xs = np.divmod(np.arange(hw, dtype=np.int64), w)
    m = np.zeros((9, hw_pad), np.float32)
    for t, (dy, dx) in enumerate(_TAPS):
        valid = (ys + dy >= 0) & (ys + dy < h) & (xs + dx >= 0) & (xs + dx < w)
        m[t, :hw] = valid.astype(np.float32)
    return m


def _vmem_bytes_per_step(img_tile, c_in, c_out, hw_pad):
    """Per-step f32 working set (double-buffered blocks + in-kernel temporaries)."""
    lane = img_tile * hw_pad
    return 4 * lane * (2 * c_in        # input block (double-buffered)
                       + 2 * c_out     # output block (double-buffered)
                       + 2 * 9         # edge masks (double-buffered)
                       + 2 * c_in      # rolled-tap temporaries
                       + c_out         # accumulator spill headroom
                       ) + (1 << 16)   # weight/bias + slack


def _pick_img_tile(n, c_in, c_out, hw_pad, *, min_steps=4, max_lane=4096,
                   vmem_budget=6 << 20):
    """Largest divisor of n that (a) keeps >= min(min_steps, n) grid steps so v7x's
    second TensorCore and the DMA pipeline have work, and (b) keeps the lane tile
    and per-step VMEM small (this kernel is memory/overhead bound, not MXU bound)."""
    target = min(min_steps, n)
    divisors = [d for d in range(1, n + 1) if n % d == 0]
    cands = [d for d in divisors if n // d >= target] or [1]

    def fits(d):
        return (d * hw_pad <= max_lane
                and _vmem_bytes_per_step(d, c_in, c_out, hw_pad) <= vmem_budget)

    fitting = [d for d in cands if fits(d)]
    return max(fitting) if fitting else min(cands)


def _vmem_limit_bytes(need_bytes):
    """Actual need + headroom, clamped against the device's physical VMEM."""
    cap = 64 << 20  # conservative default (v7x per-TC VMEM)
    try:
        cap = int(pltpu.get_tpu_info().vmem_capacity_bytes)
    except Exception:
        pass
    return int(min(max(4 * need_bytes, 16 << 20), int(0.9 * cap)))


def _texture_kernel(x_ref, w_ref, b_ref, m_ref, o_ref, *, c_in, c_out, width,
                    mxu_bf16):
    """One lane tile: (C_in, lane) -> (C_out, lane), lane = img_tile * hw_pad."""
    lane = x_ref.shape[1]
    xb = x_ref[...]                                        # (C_in, lane) f32
    mxu_dtype = jnp.bfloat16 if mxu_bf16 else jnp.float32

    acc = jnp.zeros((c_out, lane), jnp.float32)
    for t, (dy, dx) in enumerate(_TAPS):
        s = dy * width + dx                                # row-major flat shift
        if s == 0:
            tap = xb                                       # centre tap: no shift/mask
        else:
            # shifted[:, p] = xb[:, p + s]; wrapped / out-of-image lanes selected to 0
            # (select, not multiply, so a NaN at the far edge can't leak through).
            rolled = pltpu.roll(xb, shift=(-s) % lane, axis=1)   # XLU slot
            tap = jnp.where(m_ref[t:t + 1, :] != 0.0, rolled, 0.0)
        # Per-tap channel mix on the MXU; bf16 feed, f32 accumulate.
        w_t = w_ref[:, t * c_in:(t + 1) * c_in].astype(mxu_dtype)   # (C_out, C_in)
        acc = acc + jnp.dot(w_t, tap.astype(mxu_dtype),
                            preferred_element_type=jnp.float32)
    o_ref[...] = jnp.maximum(acc + b_ref[...], 0.0).astype(o_ref.dtype)


class TextureModulePallas:
    """Pallas TPU forward of TextureModule:
       cat([relu(conv1x1(x)), relu(conv3x3_pad1(x))], dim=1), NCHW in/out.

    Weight/bias packing happens once at construction; edge masks are cached per
    (H, W, img_tile)."""

    def __init__(self, w_hi, b_hi, w_lo, b_lo, *, mxu_bf16=True,
                 out_dtype=jnp.float32):
        c_half, c_in, kh, kw = w_lo.shape
        assert (kh, kw) == (3, 3)
        assert w_hi.shape == (c_half, c_in, 1, 1)
        assert b_hi.shape == (c_half,) and b_lo.shape == (c_half,)
        self.c_in, self.c_half, self.c_out = c_in, c_half, 2 * c_half
        self.mxu_bf16 = bool(mxu_bf16)
        self.out_dtype = out_dtype   # bf16 here halves HBM writeback if acceptable

        # Fused per-tap weight (C_out, 9*C_in): column index = tap*C_in + channel.
        # Rows 0:c_half = 1x1 ("high_freq") branch folded into the centre tap;
        # rows c_half: = 3x3 ("low_freq") branch -> branch concat == row stacking.
        hi = jnp.zeros((c_half, 9 * c_in), jnp.float32)
        hi = hi.at[:, _CENTER * c_in:(_CENTER + 1) * c_in].set(
            w_hi.reshape(c_half, c_in).astype(jnp.float32))
        lo = jnp.transpose(w_lo.astype(jnp.float32), (0, 2, 3, 1)).reshape(c_half, 9 * c_in)
        self.w_fused = jnp.concatenate([hi, lo], axis=0)               # (C_out, 9*C_in)
        self.bias = jnp.concatenate([b_hi, b_lo]).reshape(self.c_out, 1).astype(jnp.float32)
        self._mask_cache = {}

    def _masks(self, h, w, hw_pad, img_tile):
        key = (h, w, hw_pad, img_tile)
        if key not in self._mask_cache:
            m = _edge_masks_np(h, w, hw_pad)
            self._mask_cache[key] = jnp.asarray(np.tile(m, (1, img_tile)))  # (9, lane)
        return self._mask_cache[key]

    def __call__(self, x, *, img_tile=None, min_steps=4):
        n, c_in, h, w = x.shape
        assert c_in == self.c_in
        assert w >= 2, "width-1 images would alias off-centre taps onto the centre tap"
        hw = h * w
        hw_pad = -(-hw // 128) * 128            # lane-dense per-image stride
        if img_tile is None:
            img_tile = _pick_img_tile(n, c_in, self.c_out, hw_pad, min_steps=min_steps)
        assert n % img_tile == 0
        lane = img_tile * hw_pad
        grid = (n // img_tile,)
        masks = self._masks(h, w, hw_pad, img_tile)

        # NCHW -> channels-major (C_in, N*HW_pad); the lane axis is the grid-tiled axis.
        x2d = jnp.transpose(x, (1, 0, 2, 3)).reshape(c_in, n, hw).astype(jnp.float32)
        x2d = jnp.pad(x2d, ((0, 0), (0, 0), (0, hw_pad - hw))).reshape(c_in, n * hw_pad)

        kernel = functools.partial(_texture_kernel, c_in=c_in, c_out=self.c_out,
                                   width=w, mxu_bf16=self.mxu_bf16)
        need = _vmem_bytes_per_step(img_tile, c_in, self.c_out, hw_pad)

        out2d = pl.pallas_call(
            kernel,
            out_shape=jax.ShapeDtypeStruct((self.c_out, n * hw_pad), self.out_dtype),
            grid=grid,
            in_specs=[
                pl.BlockSpec((c_in, lane), lambda i: (0, i)),         # input lane tile
                pl.BlockSpec(self.w_fused.shape, lambda i: (0, 0)),   # fused weight (~1 KB)
                pl.BlockSpec(self.bias.shape, lambda i: (0, 0)),      # bias
                pl.BlockSpec(masks.shape, lambda i: (0, 0)),          # 3x3 edge masks
            ],
            out_specs=pl.BlockSpec((self.c_out, lane), lambda i: (0, i)),
            compiler_params=pltpu.CompilerParams(
                dimension_semantics=("parallel",),       # lane tiles independent (2 TCs on v7x)
                vmem_limit_bytes=_vmem_limit_bytes(need),
            ),
        )(x2d, self.w_fused, self.bias, masks)

        out = out2d.reshape(self.c_out, n, hw_pad)[:, :, :hw]          # crop lane padding
        return jnp.transpose(out.reshape(self.c_out, n, h, w), (1, 0, 2, 3))


def texture_forward(x, w_hi, b_hi, w_lo, b_lo, **kwargs):
    """Functional convenience wrapper (packs weights on every call; prefer the class)."""
    call_kwargs = {k: kwargs.pop(k) for k in ("img_tile", "min_steps") if k in kwargs}
    return TextureModulePallas(w_hi, b_hi, w_lo, b_lo, **kwargs)(x, **call_kwargs)


# ---------------------------------------------------------------------------
# Independent pure-JAX reference (XLA convs at HIGHEST precision).
# ---------------------------------------------------------------------------
def texture_reference(x, w_hi, b_hi, w_lo, b_lo):
    def conv(a, wgt, pad):
        return jax.lax.conv_general_dilated(
            a, wgt, window_strides=(1, 1), padding=pad,
            dimension_numbers=("NCHW", "OIHW", "NCHW"),
            precision=jax.lax.Precision.HIGHEST)
    hi = jnp.maximum(conv(x, w_hi, ((0, 0), (0, 0))) + b_hi[None, :, None, None], 0.0)
    lo = jnp.maximum(conv(x, w_lo, ((1, 1), (1, 1))) + b_lo[None, :, None, None], 0.0)
    return jnp.concatenate([hi, lo], axis=1)


if __name__ == "__main__":
    key = jax.random.PRNGKey(0)
    kx, k1, k2, k3, k4, kx2 = jax.random.split(key, 6)
    N, C_IN, C_OUT, H, W = 4, 4, 8, 16, 16

    # Round test data to bf16-exact values: every bf16 MXU product is then exact in
    # f32, so a tight tolerance holds even with the bf16 feed (deliberate tradeoff).
    def bf16_exact(a):
        return a.astype(jnp.bfloat16).astype(jnp.float32)

    x = bf16_exact(jax.random.normal(kx, (N, C_IN, H, W), jnp.float32))
    w_hi = bf16_exact(jax.random.normal(k1, (C_OUT // 2, C_IN, 1, 1), jnp.float32) * 0.2)
    b_hi = bf16_exact(jax.random.normal(k2, (C_OUT // 2,), jnp.float32) * 0.1)
    w_lo = bf16_exact(jax.random.normal(k3, (C_OUT // 2, C_IN, 3, 3), jnp.float32) * 0.2)
    b_lo = bf16_exact(jax.random.normal(k4, (C_OUT // 2,), jnp.float32) * 0.1)

    module = TextureModulePallas(w_hi, b_hi, w_lo, b_lo)   # weights packed once here
    ref = jax.block_until_ready(texture_reference(x, w_hi, b_hi, w_lo, b_lo))

    # Default tiling: 1 image / step -> grid=(4,), lane-dense 256-wide output blocks.
    out = jax.block_until_ready(module(x))
    np.testing.assert_allclose(np.asarray(out), np.asarray(ref), rtol=1e-4, atol=1e-4)

    # 2 images per lane tile (grid=(2,)): exercises cross-image roll masking.
    out2 = jax.block_until_ready(module(x, img_tile=2))
    np.testing.assert_allclose(np.asarray(out2), np.asarray(ref), rtol=1e-4, atol=1e-4)

    # Non-128-multiple spatial size (10x10 -> each image padded to 128 lanes).
    x_odd = bf16_exact(jax.random.normal(kx2, (N, C_IN, 10, 10), jnp.float32))
    ref_odd = jax.block_until_ready(texture_reference(x_odd, w_hi, b_hi, w_lo, b_lo))
    out_odd = jax.block_until_ready(module(x_odd))
    np.testing.assert_allclose(np.asarray(out_odd), np.asarray(ref_odd), rtol=1e-4, atol=1e-4)

    print("KERNEL_OK")
</pallas_src>

<mosaic_0001>
module attributes {stable_mosaic.version = 11 : i64} {
  func.func @_texture_kernel(%arg0: i32, %arg1: memref<4x256xf32, #tpu.memory_space<vmem>>, %arg2: memref<8x36xf32, #tpu.memory_space<vmem>>, %arg3: memref<8x1xf32, #tpu.memory_space<vmem>>, %arg4: memref<9x256xf32, #tpu.memory_space<vmem>>, %arg5: memref<8x256xf32, #tpu.memory_space<vmem>>) attributes {dimension_semantics = [#tpu.dimension_semantics<parallel>], iteration_bounds = array<i64: 4>, scalar_prefetch = 0 : i64, scratch_operands = 0 : i64, tpu.core_type = #tpu.core_type<tc>, window_params = [{transform_indices = @transform_0, window_bounds = array<i64: 4, 256>}, {pipeline_mode = #tpu.pipeline_mode<synchronous>, transform_indices = @transform_1, window_bounds = array<i64: 8, 36>}, {pipeline_mode = #tpu.pipeline_mode<synchronous>, transform_indices = @transform_2, window_bounds = array<i64: 8, 1>}, {pipeline_mode = #tpu.pipeline_mode<synchronous>, transform_indices = @transform_3, window_bounds = array<i64: 9, 256>}, {transform_indices = @transform_4, window_bounds = array<i64: 8, 256>}]} {
    %c0 = arith.constant 0 : index
    %c0_0 = arith.constant 0 : index
    %0 = vector.load %arg1[%c0, %c0_0] : memref<4x256xf32, #tpu.memory_space<vmem>>, vector<4x256xf32>
    %cst = arith.constant 0.000000e+00 : f32
    %1 = vector.broadcast %cst : f32 to vector<8x256xf32>
    %c17_i32 = arith.constant 17 : i32
    %2 = tpu.dynamic_rotate %0 by %c17_i32 dim 1 : vector<4x256xf32>, i32 -> vector<4x256xf32>
    %c0_1 = arith.constant 0 : index
    %c0_2 = arith.constant 0 : index
    %3 = vector.load %arg4[%c0_1, %c0_2] : memref<9x256xf32, #tpu.memory_space<vmem>>, vector<1x256xf32>
    %cst_3 = arith.constant 0.000000e+00 : f32
    %4 = vector.broadcast %cst_3 : f32 to vector<1x256xf32>
    %5 = arith.cmpf one, %3, %4 : vector<1x256xf32>
    %cst_4 = arith.constant 0.000000e+00 : f32
    %6 = vector.shape_cast %5 : vector<1x256xi1> to vector<1x256xi1>
    %7 = vector.broadcast %6 : vector<1x256xi1> to vector<4x256xi1>
    %8 = vector.broadcast %cst_4 : f32 to vector<4x256xf32>
    %9 = arith.select %7, %2, %8 : vector<4x256xi1>, vector<4x256xf32>
    %c0_5 = arith.constant 0 : index
    %c0_6 = arith.constant 0 : index
    %10 = vector.load %arg2[%c0_5, %c0_6] : memref<8x36xf32, #tpu.memory_space<vmem>>, vector<8x4xf32>
    %11 = arith.truncf %10 : vector<8x4xf32> to vector<8x4xbf16>
    %12 = arith.truncf %9 : vector<4x256xf32> to vector<4x256xbf16>
    %cst_7 = arith.constant dense<0.000000e+00> : vector<8x256xf32>
    %13 = tpu.matmul %11, %12, %cst_7 {dimension_numbers = #tpu.dot_dimension_numbers<[1], [0], [0], [1], [0, 0, 1, 1], [], []>} : vector<8x4xbf16>, vector<4x256xbf16>, vector<8x256xf32> -> vector<8x256xf32>
    %14 = arith.addf %1, %13 : vector<8x256xf32>
    %c16_i32 = arith.constant 16 : i32
    %15 = tpu.dynamic_rotate %0 by %c16_i32 dim 1 : vector<4x256xf32>, i32 -> vector<4x256xf32>
    %c1 = arith.constant 1 : index
    %c0_8 = arith.constant 0 : index
    %16 = vector.load %arg4[%c1, %c0_8] : memref<9x256xf32, #tpu.memory_space<vmem>>, vector<1x256xf32>
    %cst_9 = arith.constant 0.000000e+00 : f32
    %17 = vector.broadcast %cst_9 : f32 to vector<1x256xf32>
    %18 = arith.cmpf one, %16, %17 : vector<1x256xf32>
    %cst_10 = arith.constant 0.000000e+00 : f32
    %19 = vector.shape_cast %18 : vector<1x256xi1> to vector<1x256xi1>
    %20 = vector.broadcast %19 : vector<1x256xi1> to vector<4x256xi1>
    %21 = vector.broadcast %cst_10 : f32 to vector<4x256xf32>
    %22 = arith.select %20, %15, %21 : vector<4x256xi1>, vector<4x256xf32>
    %c0_11 = arith.constant 0 : index
    %c4 = arith.constant 4 : index
    %23 = vector.load %arg2[%c0_11, %c4] : memref<8x36xf32, #tpu.memory_space<vmem>>, vector<8x4xf32>
    %24 = arith.truncf %23 : vector<8x4xf32> to vector<8x4xbf16>
    %25 = arith.truncf %22 : vector<4x256xf32> to vector<4x256xbf16>
    %cst_12 = arith.constant dense<0.000000e+00> : vector<8x256xf32>
    %26 = tpu.matmul %24, %25, %cst_12 {dimension_numbers = #tpu.dot_dimension_numbers<[1], [0], [0], [1], [0, 0, 1, 1], [], []>} : vector<8x4xbf16>, vector<4x256xbf16>, vector<8x256xf32> -> vector<8x256xf32>
    %27 = arith.addf %14, %26 : vector<8x256xf32>
    %c15_i32 = arith.constant 15 : i32
    %28 = tpu.dynamic_rotate %0 by %c15_i32 dim 1 : vector<4x256xf32>, i32 -> vector<4x256xf32>
    %c2 = arith.constant 2 : index
    %c0_13 = arith.constant 0 : index
    %29 = vector.load %arg4[%c2, %c0_13] : memref<9x256xf32, #tpu.memory_space<vmem>>, vector<1x256xf32>
    %cst_14 = arith.constant 0.000000e+00 : f32
    %30 = vector.broadcast %cst_14 : f32 to vector<1x256xf32>
    %31 = arith.cmpf one, %29, %30 : vector<1x256xf32>
    %cst_15 = arith.constant 0.000000e+00 : f32
    %32 = vector.shape_cast %31 : vector<1x256xi1> to vector<1x256xi1>
    %33 = vector.broadcast %32 : vector<1x256xi1> to vector<4x256xi1>
    %34 = vector.broadcast %cst_15 : f32 to vector<4x256xf32>
    %35 = arith.select %33, %28, %34 : vector<4x256xi1>, vector<4x256xf32>
    %c0_16 = arith.constant 0 : index
    %c8 = arith.constant 8 : index
    %36 = vector.load %arg2[%c0_16, %c8] : memref<8x36xf32, #tpu.memory_space<vmem>>, vector<8x4xf32>
    %37 = arith.truncf %36 : vector<8x4xf32> to vector<8x4xbf16>
    %38 = arith.truncf %35 : vector<4x256xf32> to vector<4x256xbf16>
    %cst_17 = arith.constant dense<0.000000e+00> : vector<8x256xf32>
    %39 = tpu.matmul %37, %38, %cst_17 {dimension_numbers = #tpu.dot_dimension_numbers<[1], [0], [0], [1], [0, 0, 1, 1], [], []>} : vector<8x4xbf16>, vector<4x256xbf16>, vector<8x256xf32> -> vector<8x256xf32>
    %40 = arith.addf %27, %39 : vector<8x256xf32>
    %c1_i32 = arith.constant 1 : i32
    %41 = tpu.dynamic_rotate %0 by %c1_i32 dim 1 : vector<4x256xf32>, i32 -> vector<4x256xf32>
    %c3 = arith.constant 3 : index
    %c0_18 = arith.constant 0 : index
    %42 = vector.load %arg4[%c3, %c0_18] : memref<9x256xf32, #tpu.memory_space<vmem>>, vector<1x256xf32>
    %cst_19 = arith.constant 0.000000e+00 : f32
    %43 = vector.broadcast %cst_19 : f32 to vector<1x256xf32>
    %44 = arith.cmpf one, %42, %43 : vector<1x256xf32>
    %cst_20 = arith.constant 0.000000e+00 : f32
    %45 = vector.shape_cast %44 : vector<1x256xi1> to vector<1x256xi1>
    %46 = vector.broadcast %45 : vector<1x256xi1> to vector<4x256xi1>
    %47 = vector.broadcast %cst_20 : f32 to vector<4x256xf32>
    %48 = arith.select %46, %41, %47 : vector<4x256xi1>, vector<4x256xf32>
    %c0_21 = arith.constant 0 : index
    %c12 = arith.constant 12 : index
    %49 = vector.load %arg2[%c0_21, %c12] : memref<8x36xf32, #tpu.memory_space<vmem>>, vector<8x4xf32>
    %50 = arith.truncf %49 : vector<8x4xf32> to vector<8x4xbf16>
    %51 = arith.truncf %48 : vector<4x256xf32> to vector<4x256xbf16>
    %cst_22 = arith.constant dense<0.000000e+00> : vector<8x256xf32>
    %52 = tpu.matmul %50, %51, %cst_22 {dimension_numbers = #tpu.dot_dimension_numbers<[1], [0], [0], [1], [0, 0, 1, 1], [], []>} : vector<8x4xbf16>, vector<4x256xbf16>, vector<8x256xf32> -> vector<8x256xf32>
    %53 = arith.addf %40, %52 : vector<8x256xf32>
    %c0_23 = arith.constant 0 : index
    %c16 = arith.constant 16 : index
    %54 = vector.load %arg2[%c0_23, %c16] : memref<8x36xf32, #tpu.memory_space<vmem>>, vector<8x4xf32>
    %55 = arith.truncf %54 : vector<8x4xf32> to vector<8x4xbf16>
    %56 = arith.truncf %0 : vector<4x256xf32> to vector<4x256xbf16>
    %cst_24 = arith.constant dense<0.000000e+00> : vector<8x256xf32>
    %57 = tpu.matmul %55, %56, %cst_24 {dimension_numbers = #tpu.dot_dimension_numbers<[1], [0], [0], [1], [0, 0, 1, 1], [], []>} : vector<8x4xbf16>, vector<4x256xbf16>, vector<8x256xf32> -> vector<8x256xf32>
    %58 = arith.addf %53, %57 : vector<8x256xf32>
    %c255_i32 = arith.constant 255 : i32
    %59 = tpu.dynamic_rotate %0 by %c255_i32 dim 1 : vector<4x256xf32>, i32 -> vector<4x256xf32>
    %c5 = arith.constant 5 : index
    %c0_25 = arith.constant 0 : index
    %60 = vector.load %arg4[%c5, %c0_25] : memref<9x256xf32, #tpu.memory_space<vmem>>, vector<1x256xf32>
    %cst_26 = arith.constant 0.000000e+00 : f32
    %61 = vector.broadcast %cst_26 : f32 to vector<1x256xf32>
    %62 = arith.cmpf one, %60, %61 : vector<1x256xf32>
    %cst_27 = arith.constant 0.000000e+00 : f32
    %63 = vector.shape_cast %62 : vector<1x256xi1> to vector<1x256xi1>
    %64 = vector.broadcast %63 : vector<1x256xi1> to vector<4x256xi1>
    %65 = vector.broadcast %cst_27 : f32 to vector<4x256xf32>
    %66 = arith.select %64, %59, %65 : vector<4x256xi1>, vector<4x256xf32>
    %c0_28 = arith.constant 0 : index
    %c20 = arith.constant 20 : index
    %67 = vector.load %arg2[%c0_28, %c20] : memref<8x36xf32, #tpu.memory_space<vmem>>, vector<8x4xf32>
    %68 = arith.truncf %67 : vector<8x4xf32> to vector<8x4xbf16>
    %69 = arith.truncf %66 : vector<4x256xf32> to vector<4x256xbf16>
    %cst_29 = arith.constant dense<0.000000e+00> : vector<8x256xf32>
    %70 = tpu.matmul %68, %69, %cst_29 {dimension_numbers = #tpu.dot_dimension_numbers<[1], [0], [0], [1], [0, 0, 1, 1], [], []>} : vector<8x4xbf16>, vector<4x256xbf16>, vector<8x256xf32> -> vector<8x256xf32>
    %71 = arith.addf %58, %70 : vector<8x256xf32>
    %c241_i32 = arith.constant 241 : i32
    %72 = tpu.dynamic_rotate %0 by %c241_i32 dim 1 : vector<4x256xf32>, i32 -> vector<4x256xf32>
    %c6 = arith.constant 6 : index
    %c0_30 = arith.constant 0 : index
    %73 = vector.load %arg4[%c6, %c0_30] : memref<9x256xf32, #tpu.memory_space<vmem>>, vector<1x256xf32>
    %cst_31 = arith.constant 0.000000e+00 : f32
    %74 = vector.broadcast %cst_31 : f32 to vector<1x256xf32>
    %75 = arith.cmpf one, %73, %74 : vector<1x256xf32>
    %cst_32 = arith.constant 0.000000e+00 : f32
    %76 = vector.shape_cast %75 : vector<1x256xi1> to vector<1x256xi1>
    %77 = vector.broadcast %76 : vector<1x256xi1> to vector<4x256xi1>
    %78 = vector.broadcast %cst_32 : f32 to vector<4x256xf32>
    %79 = arith.select %77, %72, %78 : vector<4x256xi1>, vector<4x256xf32>
    %c0_33 = arith.constant 0 : index
    %c24 = arith.constant 24 : index
    %80 = vector.load %arg2[%c0_33, %c24] : memref<8x36xf32, #tpu.memory_space<vmem>>, vector<8x4xf32>
    %81 = arith.truncf %80 : vector<8x4xf32> to vector<8x4xbf16>
    %82 = arith.truncf %79 : vector<4x256xf32> to vector<4x256xbf16>
    %cst_34 = arith.constant dense<0.000000e+00> : vector<8x256xf32>
    %83 = tpu.matmul %81, %82, %cst_34 {dimension_numbers = #tpu.dot_dimension_numbers<[1], [0], [0], [1], [0, 0, 1, 1], [], []>} : vector<8x4xbf16>, vector<4x256xbf16>, vector<8x256xf32> -> vector<8x256xf32>
    %84 = arith.addf %71, %83 : vector<8x256xf32>
    %c240_i32 = arith.constant 240 : i32
    %85 = tpu.dynamic_rotate %0 by %c240_i32 dim 1 : vector<4x256xf32>, i32 -> vector<4x256xf32>
    %c7 = arith.constant 7 : index
    %c0_35 = arith.constant 0 : index
    %86 = vector.load %arg4[%c7, %c0_35] : memref<9x256xf32, #tpu.memory_space<vmem>>, vector<1x256xf32>
    %cst_36 = arith.constant 0.000000e+00 : f32
    %87 = vector.broadcast %cst_36 : f32 to vector<1x256xf32>
    %88 = arith.cmpf one, %86, %87 : vector<1x256xf32>
    %cst_37 = arith.constant 0.000000e+00 : f32
    %89 = vector.shape_cast %88 : vector<1x256xi1> to vector<1x256xi1>
    %90 = vector.broadcast %89 : vector<1x256xi1> to vector<4x256xi1>
    %91 = vector.broadcast %cst_37 : f32 to vector<4x256xf32>
    %92 = arith.select %90, %85, %91 : vector<4x256xi1>, vector<4x256xf32>
    %c0_38 = arith.constant 0 : index
    %c28 = arith.constant 28 : index
    %93 = vector.load %arg2[%c0_38, %c28] : memref<8x36xf32, #tpu.memory_space<vmem>>, vector<8x4xf32>
    %94 = arith.truncf %93 : vector<8x4xf32> to vector<8x4xbf16>
    %95 = arith.truncf %92 : vector<4x256xf32> to vector<4x256xbf16>
    %cst_39 = arith.constant dense<0.000000e+00> : vector<8x256xf32>
    %96 = tpu.matmul %94, %95, %cst_39 {dimension_numbers = #tpu.dot_dimension_numbers<[1], [0], [0], [1], [0, 0, 1, 1], [], []>} : vector<8x4xbf16>, vector<4x256xbf16>, vector<8x256xf32> -> vector<8x256xf32>
    %97 = arith.addf %84, %96 : vector<8x256xf32>
    %c239_i32 = arith.constant 239 : i32
    %98 = tpu.dynamic_rotate %0 by %c239_i32 dim 1 : vector<4x256xf32>, i32 -> vector<4x256xf32>
    %c8_40 = arith.constant 8 : index
    %c0_41 = arith.constant 0 : index
    %99 = vector.load %arg4[%c8_40, %c0_41] : memref<9x256xf32, #tpu.memory_space<vmem>>, vector<1x256xf32>
    %cst_42 = arith.constant 0.000000e+00 : f32
    %100 = vector.broadcast %cst_42 : f32 to vector<1x256xf32>
    %101 = arith.cmpf one, %99, %100 : vector<1x256xf32>
    %cst_43 = arith.constant 0.000000e+00 : f32
    %102 = vector.shape_cast %101 : vector<1x256xi1> to vector<1x256xi1>
    %103 = vector.broadcast %102 : vector<1x256xi1> to vector<4x256xi1>
    %104 = vector.broadcast %cst_43 : f32 to vector<4x256xf32>
    %105 = arith.select %103, %98, %104 : vector<4x256xi1>, vector<4x256xf32>
    %c0_44 = arith.constant 0 : index
    %c32 = arith.constant 32 : index
    %106 = vector.load %arg2[%c0_44, %c32] : memref<8x36xf32, #tpu.memory_space<vmem>>, vector<8x4xf32>
    %107 = arith.truncf %106 : vector<8x4xf32> to vector<8x4xbf16>
    %108 = arith.truncf %105 : vector<4x256xf32> to vector<4x256xbf16>
    %cst_45 = arith.constant dense<0.000000e+00> : vector<8x256xf32>
    %109 = tpu.matmul %107, %108, %cst_45 {dimension_numbers = #tpu.dot_dimension_numbers<[1], [0], [0], [1], [0, 0, 1, 1], [], []>} : vector<8x4xbf16>, vector<4x256xbf16>, vector<8x256xf32> -> vector<8x256xf32>
    %110 = arith.addf %97, %109 : vector<8x256xf32>
    %c0_46 = arith.constant 0 : index
    %c0_47 = arith.constant 0 : index
    %111 = vector.load %arg3[%c0_46, %c0_47] : memref<8x1xf32, #tpu.memory_space<vmem>>, vector<8x1xf32>
    %112 = vector.broadcast %111 : vector<8x1xf32> to vector<8x256xf32>
    %113 = arith.addf %110, %112 : vector<8x256xf32>
    %cst_48 = arith.constant 0.000000e+00 : f32
    %114 = vector.broadcast %cst_48 : f32 to vector<8x256xf32>
    %115 = arith.maximumf %113, %114 : vector<8x256xf32>
    %c0_49 = arith.constant 0 : index
    %c0_50 = arith.constant 0 : index
    %116 = vector.load %arg5[%c0_49, %c0_50] : memref<8x256xf32, #tpu.memory_space<vmem>>, vector<8x256xf32>
    tpu.vector_store %arg5[%c0_49, %c0_50], %115 {strides = array<i32>} : memref<8x256xf32, #tpu.memory_space<vmem>>, vector<8x256xf32>,
    return
  }
  func.func @transform_0(%arg0: i32) -> (i32, i32) {
    %c0_i32 = arith.constant 0 : i32
    %c0_i32_0 = arith.constant 0 : i32
    return %c0_i32, %arg0 : i32, i32
  }
  func.func @transform_1(%arg0: i32) -> (i32, i32) {
    %c0_i32 = arith.constant 0 : i32
    %c0_i32_0 = arith.constant 0 : i32
    %c0_i32_1 = arith.constant 0 : i32
    return %c0_i32, %c0_i32_0 : i32, i32
  }
  func.func @transform_2(%arg0: i32) -> (i32, i32) {
    %c0_i32 = arith.constant 0 : i32
    %c0_i32_0 = arith.constant 0 : i32
    %c0_i32_1 = arith.constant 0 : i32
    return %c0_i32, %c0_i32_0 : i32, i32
  }
  func.func @transform_3(%arg0: i32) -> (i32, i32) {
    %c0_i32 = arith.constant 0 : i32
    %c0_i32_0 = arith.constant 0 : i32
    %c0_i32_1 = arith.constant 0 : i32
    return %c0_i32, %c0_i32_0 : i32, i32
  }
  func.func @transform_4(%arg0: i32) -> (i32, i32) {
    %c0_i32 = arith.constant 0 : i32
    %c0_i32_0 = arith.constant 0 : i32
    return %c0_i32, %arg0 : i32, i32
  }
}

</mosaic_0001>

<bundles_post_ra>
// kernel: tpu_custom_call.1
= control target key start
LH: loop header
LB: loop body
LE: loop exit
PB: predicated region body
PF: predicated region fallthrough
CT: control target
= control target key end

     0   :  { %9 = vsyncpa [#allocation3], 0  ;;  %s1799_s0 = inlined_call_operand.hbm [shape: f32[4,1024], index: 0, kind: input, shape index: {}]   ;;  %s1800_s1 = inlined_call_operand.vmem [shape: f32[8,36], index: 1, kind: input, shape index: {}]   ;;  %s1801_s2 = inlined_call_operand.vmem [shape: f32[8,1], index: 2, kind: input, shape index: {}]   ;;  %s1802_s3 = inlined_call_operand.hbm [shape: f32[9,256], index: 3, kind: input, shape index: {}]   ;;  %s1803_s4 = inlined_call_operand.hbm [shape: f32[8,1024], index: 4, kind: output, shape index: {}]  }
   0x1   :  { %11 = vsyncpa [#allocation3 + $0x1], 0 }
   0x2   :  { %12 = vsyncpa [#allocation6], 0 }
   0x3   :  { %13 = vsyncpa [#allocation4], 0 }
   0x4   :  { %15 = vsyncpa [#allocation4 + $0x1], 0  ;;  %s1378_s15 = smov 0   ;;  %s1380_s16 = smov 0  }
   0x5   :  { %s1382_s17 = smov 0   ;;  %s1384_s18 = smov 0  }
   0x6 LB: > { %s1399_s19 = sadd.s32 4294967295, %s1330_s18   ;;  %s1049_s20 = sadd.s32 4294967294, %s1330_s18   ;;  %s1330_s18 = sphi %s1384_s18, %s1857_s18   ;;  %s1326_s17 = sphi %s1382_s17, %s1856_s17   ;;  %s1322_s16 = sphi %s1380_s16, %s1855_s16   ;;  %s1318_s15 = sphi %s1378_s15, %s1854_s15  }
   0x7   : > { %p41_p0 = scmp.ne.s32.totalorder %s1322_s16, %s1318_s15  ;;  %p1804_p1 = scmp.eq.s32.totalorder %s1399_s19, 0 }
   0x8   : > { %p134_p3 = scmp.eq.s32.totalorder %s1049_s20, 3  ;;  %p1050_p5 = scmp.ge.s32.totalorder %s1330_s18, 1 }
   0x9   : > { %p1408_p4 = por %p1804_p1, %p41_p0  ;;  %p141_p7 = scmp.lt.s32.totalorder %s1330_s18, 5 }
   0xa   : > { %p1413_p6 = por %p134_p3, %p41_p0  ;;  %s1332_s24 = smov [#allocation5]  }
   0xb   : > { %s1807_s21 = scalar_select %p1408_p4, 1, 0 }
   0xc   : > { %s1808_s22 = scalar_select %p1413_p6, 1, 0 }
   0xd   : > { %p1418_p8 = pnand %p1050_p5, %p141_p7  ;;  %s159_s25 = sshll.u32 %s1332_s24, 4  ;;  %s160_s25 = int_to_ptr.vmem [resolvable:$true] %s159_s25 }
   0xe   : > { %s1431_s27 = sadd.s32 1, %s1330_s18   ;;  %s28_s28 = sadd.s32 1, %s1326_s17 }
   0xf   : > { %s1809_s23 = scalar_select %p1418_p8, 1, 0 }
  0x10   : > { %p1093_p9 = pneg %p1418_p8  ;;  %s25_s29 = ssub.s32 %s1330_s18, %s1431_s27 }
  0x11   : > { %s1202_s6 = scalar_lea.hbm %s1802_s3, 512 }
  0x12   : > { %p1426_p10 = pnand %p1093_p9, %p1804_p1  ;;  %p1203_p11 = scmp.ne.s32.totalorder %s1802_s3, %s1202_s6 }
  0x13   : > { %p1209_p3 = scmp.lt.u32.totalorder %s1202_s6, %s1802_s3 }
  0x14   : > { %p1204_p12 = pneg %p1426_p10 }
  0x16   : > { %p1205_p13 = pnand %p1204_p12, %p1203_p11 }
  0x18   : > { %p1206_p0 = pneg %p1205_p13 }
  0x1a   : > { %p1211_p5 = pnand %p1209_p3, %p1206_p0 }
  0x1c   : > { %1214 = shalt.err (!%p1211_p5)
}
  0x1d   : > { %s1215_s11 = scalar_lea.vmem %s160_s25, 512  ;;  %p1223_p2 = scmp.lt.s32.totalorder %s160_s25, %s160_s25 }
  0x1e   : > { %p1216_p7 = scmp.ne.s32.totalorder %s160_s25, %s1215_s11  ;;  %p1224_p6 = scmp.lt.s32.totalorder %s1215_s11, %s1215_s11 }
  0x20   : > { %p1218_p9 = pnand %p1216_p7, %p1204_p12  ;;  %p1225_p4 = por %p1224_p6, %p1223_p2 }
  0x22   : > { %p1219_p1 = pneg %p1218_p9 }
  0x24   : > { %p1226_p8 = pnand %p1225_p4, %p1219_p1 }
  0x26   : > { %1229 = shalt.err (!%p1226_p8)
}
  0x27   : > { %s1333_s12 = smov 256   ;;  %s1334_s13 = smov 16  }
  0x28   : > { %1096 = dma.hbm_to_vmem [thread:$0]  (!%p1426_p10), %s1802_s3, 512, %s160_s25, [#allocation6], %s1333_s12, %s1333_s12, %s1334_s13  }
  0x29   : > { %p26_p11 = scmp.eq.s32.totalorder %s25_s29, 0  ;;  %p35_p2 = scmp.ne.s32.totalorder %s1326_s17, %s1322_s16 }
  0x2a   : > { %p36_p1 = scmp.eq.s32.totalorder %s1330_s18, 0  ;;  %p1106_p4 = scmp.lt.s32.totalorder %s1330_s18, 4 }
  0x2b   : > { %s1457_s24 = scalar_select %p26_p11, %s1326_s17, %s28_s28  }
  0x2c   : > { %p37_p6 = por %p36_p1, %p35_p2  ;;  %p1811_p8 = scmp.eq.s32.totalorder %s1399_s19, 3 }
  0x2d   : > { %s173_s5 = sand.u32 1, %s1326_s17   ;;  %s1083_s6 = sshll.u32 %s1330_s18, 7 }
  0x2e   : > { %p1461_p12 = por %p1811_p8, %p35_p2  ;;  %s1053_s7 = sshll.u32 %s173_s5, 3 }
  0x2f   : > { %s1470_s9 = scalar_lea.hbm %s1799_s0, %s1083_s6  ;;  %s177_s25 = scalar_lea.vmem [#allocation2], %s1053_s7 }
  0x30   : > { %s185_s28 = sshll.u32 %s177_s25, 4  ;;  %p1472_p10 = pnand %p1106_p4, %p37_p6  ;;  %s1476_s28 = int_to_ptr.vmem [resolvable:$true] %s185_s28 }
  0x31   : > { %s174_s10 = scalar_lea.sflag [#allocation3], %s173_s5  ;;  %s1230_s11 = scalar_lea.hbm %s1470_s9, 128 }
  0x32   : > { %p1231_p13 = scmp.ne.s32.totalorder %s1470_s9, %s1230_s11  ;;  %p1232_p0 = pneg %p1472_p10 }
  0x33   : > { %s1235_s14 = scalar_lea.hbm %s1799_s0, 512  ;;  %p1236_p7 = scmp.lt.u32.totalorder %s1470_s9, %s1799_s0 }
  0x34   : > { %p1233_p3 = pnand %p1232_p0, %p1231_p13  ;;  %p1237_p9 = scmp.lt.u32.totalorder %s1235_s14, %s1230_s11 }
  0x35   : > { %p1239_p2 = scmp.lt.u32.totalorder %s1230_s11, %s1470_s9 }
  0x36   : > { %p1234_p5 = pneg %p1233_p3  ;;  %p1238_p11 = por %p1237_p9, %p1236_p7 }
  0x38   : > { %p1240_p1 = por %p1239_p2, %p1238_p11 }
  0x3a   : > { %p1241_p4 = pnand %p1240_p1, %p1234_p5 }
  0x3c   : > { %1244 = shalt.err (!%p1241_p4)
}
  0x3d   : > { %s1245_s5 = scalar_lea.vmem %s1476_s28, 128  ;;  %s1335_s7 = smov [#allocation2]  }
  0x3e   : > { %p1246_p6 = scmp.ne.s32.totalorder %s1476_s28, %s1245_s5  ;;  %s1250_s26 = sshll.u32 %s1335_s7, 4  ;;  %s1251_s26 = int_to_ptr.vmem [resolvable:$false] %s1250_s26 }
  0x3f   : > { %s1252_s8 = scalar_lea.vmem %s1251_s26, 256  ;;  %p1253_p3 = scmp.lt.s32.totalorder %s1476_s28, %s1251_s26 }
  0x40   : > { %p1248_p8 = pnand %p1246_p6, %p1232_p0  ;;  %p1254_p7 = scmp.lt.s32.totalorder %s1252_s8, %s1245_s5 }
  0x42   : > { %p1249_p13 = pneg %p1248_p8  ;;  %p1255_p9 = por %p1254_p7, %p1253_p3 }
  0x44   : > { %p1256_p11 = pnand %p1255_p9, %p1249_p13 }
  0x46   : > { %1259 = shalt.err (!%p1256_p11)
}
  0x47   : > { %1100 = dma.hbm_to_vmem [thread:$0]  (!%p1472_p10), %s1470_s9, 128, %s1476_s28, %s174_s10  }
  0x48   : > { %p1814_p5 = scmp.ne.s32.totalorder %s1809_s23, 0 }
  0x49   : > { %s1506_s25 = sand.u32 (!%p1814_p5), 1, %s1322_s16   ;;  %p1815_p0 = scmp.ne.s32.totalorder (!%p1814_p5), %s1807_s21, 0 }
  0x4a   : > { %194 = sbr.rel (%p1814_p5) target bundleno = 482 (0x1e2), region = 36  ;;  %s1057_s11 = sshll.u32 (!%p1814_p5), %s1506_s25, 3 }
  0x4b   : > { %s197_s12 = scalar_lea.sflag (!%p1814_p5), [#allocation3], %s1506_s25  ;;  %s200_s13 = scalar_lea.vmem (!%p1814_p5), [#allocation2], %s1057_s11 }
  0x51   : > { %1305 = dma.done.wait (%p1815_p0), %s197_s12, 128  }
  0x52   : > { %1307 = vsyncadd (%p1815_p0), %s197_s12, 4294967168  ;;  %p1816_p2 = scmp.eq.s32.totalorder %s1399_s19, 0 }
  0x54   : > { %1309 = dma.done.wait (%p1816_p2), [#allocation6], 512   ;;  %p1817_p10 = pmov %p1816_p2 }
  0x55   : > { %v1336_v0 = vmov 0   ;;  %v260_v1 = vld [vmem:[%s1800_s1] sm:$0xff]  ;;  %s1337_s21 = smov 124   ;;  %s1338_s28 = smov 16   ;;  %v240_v7 = vlaneseq  ;;  %vm296_vm8 = vcmask 1041408  }
  0x56   : > { %1311 = vsyncadd (%p1817_p10), [#allocation6], 4294966784  ;;  %335 = vmatprep.mubr.bf16.mxu0 %v1336_v0  ;;  %385 = vmatprep.mubr.bf16.mxu1 %v1336_v0  ;;  %v1524_v2 = vld [vmem:[%s200_s13] sm:$0xff]  ;;  %v1526_v3 = vpack.c.bf16 %v260_v1, %v260_v1  ;;  %s1339_s29 = smov 15   ;;  %s1340_s10 = smov 17  }
  0x57   : > { %1200 = vset.pattern.permute.xlu0 %v1336_v0  ;;  %v1530_v4 = vcombine.high %v1524_v2, %v1524_v2  ;;  %s1341_s14 = smov 120   ;;  %s1342_s20 = smov 1   ;;  %v942_v6 = vld [vmem:[%s1801_s2] sm:$0xff]  ;;  %v402_v8 = vld [vmem:[#allocation5 + $0x2] ss:$8 sm:$0x3]  ;;  %v558_v48 = vpack.c.bf16 %v1524_v2, %v1524_v2 }
  0x58   : > { %290 = vrot.lane.b32.xlu1 %v1526_v3, %s1337_s21  ;;  %s1343_s6 = smov 127   ;;  %s1344_s5 = smov 116   ;;  %v272_v9 = vld [vmem:[#allocation5 + $0x1] ss:$8 sm:$0x3]  ;;  %v249_v11 = vshrl.u32 %v240_v7, 7 }
  0x59   : > { %v1160_v5 = vpack.i.bf16 %v1530_v4, %v1524_v2  ;;  %s1345_s7 = smov 113   ;;  %s1346_s26 = smov 112   ;;  %v245_v10 = vld [vmem:[#allocation5] ss:$8 sm:$0x3]  ;;  %vm403_vm0 = vcmp.ne.f32.partialorder %v402_v8, 0.0  ;;  %v559_v46 = vpack.c.bf16 %v1530_v4, %v1530_v4 }
  0x5a   : > { %s1347_s8 = smov 108   ;;  %s1348_s11 = smov 111   ;;  %v484_v12 = vld [vmem:[#allocation5 + $0x3] ss:$8 sm:$0x3]  ;;  %vm273_vm1 = vcmp.ne.f32.partialorder %v272_v9, 0.0 }
  0x5b   : > { %1161 = vrot.lane.b32.xlu0 %v1160_v5, %s1338_s28  ;;  %s1349_s12 = smov 104   ;;  %s1350_s13 = smov 96   ;;  %vm246_vm2 = vcmp.ne.f32.partialorder %v245_v10, 0.0  ;;  %vm485_vm3 = vcmp.ne.f32.partialorder %v484_v12, 0.0  ;;  %v1545_v14 = vsub.s32 1, %v249_v11  ;;  %v404_v15 = vsel %vm403_vm0, 1, %v1336_v0 }
  0x5c   : > { %1171 = vrot.lane.b32.xlu1 %v1160_v5, %s1339_s29  ;;  %s1351_s23 = smov 100   ;;  %v622_v13 = vld [vmem:[#allocation5 + $0x5] ss:$8 sm:$0x3]  ;;  %v1548_v16 = vsub.s32 0, %v249_v11  ;;  %v274_v17 = vsel %vm273_vm1, 1, %v1336_v0 }
  0x5d   : > { %v247_v18 = vsel %vm246_vm2, 1, %v1336_v0  ;;  %v1552_v19 = vand.u32 127, %v240_v7  ;;  %v486_v20 = vsel %vm485_vm3, 1, %v1336_v0  ;;  %vm623_vm4 = vcmp.ne.f32.partialorder %v622_v13, 0.0  ;;  %s1059_s28 = sshll.u32 %s1506_s25, 4  ;;  %s1084_s29 = sshll.u32 %s1399_s19, 8 }
  0x5e   : > { %v412_v21 = vrot.slane %v404_v15, %v1545_v14  ;;  %v282_v22 = vrot.slane %v274_v17, %v1545_v14  ;;  %v278_v23 = vrot.slane %v274_v17, %v1548_v16  ;;  %v255_v24 = vrot.slane %v247_v18, %v1545_v14  ;;  %v704_v25 = vld [vmem:[#allocation5 + $0x6] ss:$8 sm:$0x3]  ;;  %v786_v43 = vld [vmem:[#allocation5 + $0x7] ss:$8 sm:$0x3] }
  0x5f   : > { %1166 = vrot.lane.b32.xlu0 %v1160_v5, %s1340_s10  ;;  %v494_v26 = vrot.slane %v486_v20, %v1545_v14  ;;  %v251_v27 = vrot.slane %v247_v18, %v1548_v16  ;;  %v408_v28 = vrot.slane %v404_v15, %v1548_v16  ;;  %v1563_v29 = vsel %vm623_vm4, 1, %v1336_v0  ;;  %v868_v11 = vld [vmem:[#allocation5 + $0x10] ss:$8 sm:$0x3]  ;;  %s228_s10 = scalar_lea.vmem [#allocation7], %s1059_s28  ;;  %s1352_s19 = smov [#allocation7]  }
  0x60   : > { %422 = vrot.lane.b32.xlu1 %v1526_v3, %s1341_s14  ;;  %vm398_vm5 = vcmp.lt.s32.totalorder %v1552_v19, 15  ;;  %vm268_vm6 = vcmp.lt.s32.totalorder %v1552_v19, 16  ;;  %v490_v31 = vrot.slane %v486_v20, %v1548_v16  ;;  %vm1570_vm7 = vcmp.eq.s32.totalorder %v412_v21, 1  ;;  %s969_s14 = sshll.u32 %s228_s10, 4  ;;  %s1758_s14 = int_to_ptr.vmem [resolvable:$true] %s969_s14 }
  0x61   : > { %vm242_vm9 = vcmp.lt.s32.totalorder %v1552_v19, 17  ;;  %vm705_vm10 = vcmp.ne.f32.partialorder %v704_v25, 0.0  ;;  %vm1575_vm11 = vcmp.eq.s32.totalorder %v282_v22, 1  ;;  %vm1579_vm12 = vcmp.eq.s32.totalorder %v278_v23, 1 }
  0x62   : > { %vm480_vm13 = vcmp.lt.s32.totalorder %v1552_v19, 1  ;;  %vm1584_vm14 = vcmp.eq.s32.totalorder %v255_v24, 1  ;;  %v632_v37 = vrot.slane %v1563_v29, %v1545_v14  ;;  %vm1590_vm15 = vcmp.eq.s32.totalorder %v494_v26, 1 }
  0x63   : > { %1176 = vrot.lane.b32.xlu0 %v1160_v5, %s1342_s20  ;;  %vm1594_vm1 = vcmp.eq.s32.totalorder %v251_v27, 1  ;;  %vm1598_vm2 = vcmp.eq.s32.totalorder %v408_v28, 1  ;;  %vm1602_vm3 = vcmp.eq.s32.totalorder %v490_v31, 1  ;;  %v1610_v47 = vsel %vm705_vm10, 1, %v1336_v0 }
  0x64   : > { %1181 = vrot.lane.b32.xlu1 %v1160_v5, %s1343_s6  ;;  %vm618_vm4 = vcmp.lt.s32.totalorder %v1552_v19, 127  ;;  %vm1623_vm10 = vcmp.eq.s32.totalorder %v632_v37, 1  ;;  %vm787_vm0 = vcmp.ne.f32.partialorder %v786_v43, 0.0  ;;  %v628_v57 = vrot.slane %v1563_v29, %v1548_v16 }
  0x65   : > { %v714_v18 = vrot.slane %v1610_v47, %v1545_v14  ;;  %v788_v26 = vsel %vm787_vm0, 1, %v1336_v0  ;;  %v710_v37 = vrot.slane %v1610_v47, %v1548_v16 }
  0x66   : > { %v792_v45 = vrot.slane %v788_v26, %v1548_v16 }
  0x67   : > { %504 = vrot.lane.b32.xlu0 %v1526_v3, %s1344_s5  ;;  %s1756_s5 = scalar_lea.hbm %s1803_s4, %s1084_s29 }
  0x68   : > { %1186 = vrot.lane.b32.xlu1 %v1160_v5, %s1345_s7  ;;  %vm1717_vm0 = vcmp.eq.s32.totalorder %v792_v45, 1  ;;  %s955_s7 = scalar_lea.sflag [#allocation4], %s1506_s25 }
  0x6b   : > { %560 = vrot.lane.b32.xlu0 %v1526_v3, %s1346_s26 }
  0x6c   : > { %1191 = vrot.lane.b32.xlu1 %v1160_v5, %s1346_s26  ;;  %s1260_s26 = scalar_lea.vmem %s1758_s14, 256 }
  0x6d   : > { %p1261_p1 = scmp.ne.s32.totalorder %s1758_s14, %s1260_s26 }
  0x6f   : > { %642 = vrot.lane.b32.xlu0 %v1526_v3, %s1347_s8  ;;  %p1262_p4 = pnand %p1261_p1, %p1461_p12  ;;  %s1264_s8 = sshll.u32 %s1352_s19, 4  ;;  %s1265_s8 = int_to_ptr.vmem [resolvable:$false] %s1264_s8 }
  0x70   : > { %1196 = vrot.lane.b32.xlu1 %v1160_v5, %s1348_s11  ;;  %s1266_s11 = scalar_lea.vmem %s1265_s8, 512  ;;  %p1267_p8 = scmp.lt.s32.totalorder %s1758_s14, %s1265_s8 }
  0x71   : > { %p1263_p6 = pneg %p1262_p4  ;;  %p1268_p13 = scmp.lt.s32.totalorder %s1266_s11, %s1260_s26 }
  0x73   : > { %724 = vrot.lane.b32.xlu0 %v1526_v3, %s1349_s12  ;;  %p1269_p3 = por %p1268_p13, %p1267_p8 }
  0x74   : > { %888 = vrot.lane.b32.xlu1 %v1526_v3, %s1350_s13 }
  0x75   : > { %p1270_p7 = pnand %p1269_p3, %p1263_p6 }
  0x77   : > { %806 = vrot.lane.b32.xlu0 %v1526_v3, %s1351_s23 }
  0x7b   : > { %945 = vperm.xlu0 %1200, %v942_v6  }
  0xca   : > { %v1565_v30 = vpop.permute.xlu1 %290 }
  0xcd   : > { %v1162_v33 = vpop.permute.xlu0 %1161 }
  0xce   : > { %v1164_v38 = vunpack.i.h.bf16 %v1162_v33  ;;  %v1163_v39 = vunpack.i.l.bf16 %v1162_v33  ;;  %v1172_v44 = vpop.permute.xlu1 %1171 }
  0xcf   : > { %v1174_v49 = vunpack.i.h.bf16 %v1172_v44  ;;  %v1173_v50 = vunpack.i.l.bf16 %v1172_v44 }
  0xd0   : > { %v269_v51 = vsel %vm268_vm6, %v1163_v39, %v1164_v38  ;;  %v270_v52 = vsel %vm268_vm6, %v1164_v38, %v1163_v39  ;;  %vm700_vm6 = vcmp.lt.s32.totalorder %v1552_v19, 113 }
  0xd1   : > { %v1167_v53 = vpop.permute.xlu0 %1166  ;;  %v286_v54 = vsel %vm1575_vm11, %v269_v51, 0.0  ;;  %v285_v55 = vsel %vm1579_vm12, %v270_v52, 0.0  ;;  %v399_v58 = vsel %vm398_vm5, %v1173_v50, %v1174_v49  ;;  %v400_v59 = vsel %vm398_vm5, %v1174_v49, %v1173_v50 }
  0xd2   : > { %v1169_v60 = vunpack.i.h.bf16 %v1167_v53  ;;  %v1168_v61 = vunpack.i.l.bf16 %v1167_v53  ;;  %v416_v62 = vsel %vm1570_vm7, %v399_v58, 0.0  ;;  %v288_v63 = vpack.c.bf16 %v286_v54, %v286_v54  ;;  %v1635_v5 = vpop.permute.xlu1 %422 }
  0xd3   : > { %v287_v1 = vpack.c.bf16 %v285_v55, %v285_v55  ;;  %v415_v6 = vsel %vm1598_vm2, %v400_v59, 0.0  ;;  %v420_v8 = vpack.c.bf16 %v416_v62, %v416_v62  ;;  %vm1656_vm5 = vcmp.eq.s32.totalorder %v628_v57, 1 }
  0xd4   : > { %v243_v7 = vsel %vm242_vm9, %v1168_v61, %v1169_v60  ;;  %v244_v9 = vsel %vm242_vm9, %v1169_v60, %v1168_v61  ;;  %v419_v10 = vpack.c.bf16 %v415_v6, %v415_v6  ;;  %1060 = vmatprep.subr.msk.bf16.mxu0 %vm296_vm8, %v288_v63  ;;  %vm869_vm7 = vcmp.ne.f32.partialorder %v868_v11, 0.0 }
  0xd5   : > { %v298_v12 = vsel %vm296_vm8, %v287_v1, 0  ;;  %v1177_v13 = vpop.permute.xlu0 %1176  ;;  %v259_v15 = vsel %vm1584_vm14, %v243_v7, 0.0  ;;  %v258_v17 = vsel %vm1594_vm1, %v244_v9, 0.0  ;;  %vm1838_vm9 = vcmask 31744  }
  0xd6   : > { %304 = vmatpush1.bf16.msra.mxu0 %v298_v12  ;;  %v1179_v20 = vunpack.i.h.bf16 %v1177_v13  ;;  %v1178_v21 = vunpack.i.l.bf16 %v1177_v13  ;;  %v263_v22 = vpack.c.bf16 %v259_v15, %v259_v15  ;;  %v262_v23 = vpack.c.bf16 %v258_v17, %v258_v17  ;;  %v1182_v25 = vpop.permute.xlu1 %1181  ;;  %vm1841_vm12 = vmmov %vm1838_vm9 }
  0xd7   : > { %1064 = vmatprep.subr.msk.bf16.mxu0 %vm296_vm8, %v420_v8  ;;  %v428_v24 = vsel %vm296_vm8, %v419_v10, 0  ;;  %v1184_v32 = vunpack.i.h.bf16 %v1182_v25  ;;  %v1183_v34 = vunpack.i.l.bf16 %v1182_v25  ;;  %vm1675_vm11 = vcmp.eq.s32.totalorder %v714_v18, 1  ;;  %vm1846_vm1 = vmmov %vm1838_vm9 }
  0xd8   : > { %v481_v28 = vsel %vm480_vm13, %v1178_v21, %v1179_v20  ;;  %v482_v29 = vsel %vm480_vm13, %v1179_v20, %v1178_v21  ;;  %1062 = vmatprep.subr.msk.bf16.mxu1 %vm296_vm8, %v263_v22  ;;  %v348_v31 = vsel %vm296_vm8, %v262_v23, 0  ;;  %v870_v44 = vsel %vm869_vm7, 1, %v1336_v0  ;;  %vm1850_vm7 = vmmov %vm1846_vm1 }
  0xd9   : > { %v498_v33 = vsel %vm1590_vm15, %v481_v28, 0.0  ;;  %1061 = vmatmul.mubr.msk.bf16.vlgmr.msra.gmra.mrb[0].mxu0 %vm1838_vm9, %v1565_v30  ;;  %354 = vmatpush1.bf16.msra.mxu1 %v348_v31  ;;  %v497_v35 = vsel %vm1602_vm3, %v482_v29, 0.0  ;;  %v505_v36 = vpop.permute.xlu0 %504  ;;  %v796_v30 = vrot.slane %v788_v26, %v1545_v14  ;;  %v619_v41 = vsel %vm618_vm4, %v1183_v34, %v1184_v32  ;;  %vm1847_vm3 = vmmov %vm1846_vm1 }
  0xda   : > { %434 = vmatpush1.bf16.msra.mxu0 %v428_v24  ;;  %v502_v38 = vpack.c.bf16 %v498_v33, %v498_v33  ;;  %465 = vmatprep.mubr.bf16.mxu0 %v1336_v0  ;;  %v501_v39 = vpack.c.bf16 %v497_v35, %v497_v35  ;;  %v620_v42 = vsel %vm618_vm4, %v1184_v32, %v1183_v34  ;;  %v1187_v43 = vpop.permute.xlu1 %1186  ;;  %vm715_vm13 = vcmp.eq.s32.totalorder %v710_v37, 1  ;;  %vm1851_vm9 = vmmov %vm1846_vm1 }
  0xdb   : > { %1068 = vmatprep.subr.msk.bf16.mxu0 %vm296_vm8, %v559_v46  ;;  %v636_v47 = vsel %vm1623_vm10, %v620_v42, 0.0  ;;  %v1189_v50 = vunpack.i.h.bf16 %v1187_v43  ;;  %v1188_v4 = vunpack.i.l.bf16 %v1187_v43  ;;  %v566_v46 = vsel %vm296_vm8, %v558_v48, 0 }
  0xdc   : > { %1063 = vmatmul.mubr.msk.bf16.vlgmr.msra.gmra.mrb[0].mxu1 %vm1841_vm12, %v1526_v3  ;;  %1066 = vmatprep.subr.msk.bf16.mxu1 %vm296_vm8, %v502_v38  ;;  %v510_v49 = vsel %vm296_vm8, %v501_v39, 0  ;;  %v640_v51 = vpack.c.bf16 %v636_v47, %v636_v47  ;;  %v635_v3 = vsel %vm1656_vm5, %v619_v41, 0.0  ;;  %vm782_vm14 = vcmp.lt.s32.totalorder %v1552_v19, 112  ;;  %vm1849_vm5 = vmmov %vm1846_vm1 }
  0xdd   : > { %516 = vmatpush1.bf16.msra.mxu1 %v510_v49  ;;  %547 = vmatprep.mubr.bf16.mxu1 %v1336_v0  ;;  %v701_v52 = vsel %vm700_vm6, %v1188_v4, %v1189_v50  ;;  %v702_v53 = vsel %vm700_vm6, %v1189_v50, %v1188_v4  ;;  %v639_v54 = vpack.c.bf16 %v635_v3, %v635_v3  ;;  %vm1712_vm15 = vcmp.eq.s32.totalorder %v796_v30, 1  ;;  %v561_v56 = vpop.permute.xlu0 %560  ;;  %vm1848_vm6 = vmmov %vm1846_vm1 }
  0xde   : > { %v718_v2 = vsel %vm1675_vm11, %v702_v53, 0.0  ;;  %1070 = vmatprep.subr.msk.bf16.mxu1 %vm296_vm8, %v640_v51  ;;  %v1192_v55 = vpop.permute.xlu1 %1191  ;;  %v878_v57 = vrot.slane %v870_v44, %v1545_v14  ;;  %v717_v62 = vsel %vm715_vm13, %v701_v52, 0.0  ;;  %v874_v63 = vrot.slane %v870_v44, %v1548_v16  ;;  %vm1852_vm11 = vmmov %vm1846_vm1 }
  0xdf   : > { %v1194_v59 = vunpack.i.h.bf16 %v1192_v55  ;;  %v1193_v60 = vunpack.i.l.bf16 %v1192_v55  ;;  %v722_v61 = vpack.c.bf16 %v718_v2, %v718_v2  ;;  %v648_v6 = vsel %vm296_vm8, %v639_v54, 0 }
  0xe0   : > { %vm864_vm2 = vcmp.lt.s32.totalorder %v1552_v19, 111  ;;  %v721_v16 = vpack.c.bf16 %v717_v62, %v717_v62  ;;  %vm880_vm4 = vcmp.eq.s32.totalorder %v878_v57, 1  ;;  %vm879_vm10 = vcmp.eq.s32.totalorder %v874_v63, 1 }
  0xe1   : > { %1065 = vmatmul.mubr.msk.bf16.vlgmr.msra.gmra.mrb[4].mxu0 %vm1846_vm1, %v1635_v5  ;;  %v783_v1 = vsel %vm782_vm14, %v1193_v60, %v1194_v59  ;;  %v784_v14 = vsel %vm782_vm14, %v1194_v59, %v1193_v60  ;;  %v643_v12 = vpop.permute.xlu0 %642 }
  0xe2   : > { %572 = vmatpush1.bf16.msra.mxu0 %v566_v46  ;;  %603 = vmatprep.mubr.bf16.mxu0 %v1336_v0  ;;  %v800_v7 = vsel %vm1712_vm15, %v784_v14, 0.0  ;;  %v1197_v5 = vpop.permute.xlu1 %1196  ;;  %v799_v8 = vsel %vm1717_vm0, %v783_v1, 0.0  ;;  %v730_v18 = vsel %vm296_vm8, %v721_v16, 0 }
  0xe3   : > { %1072 = vmatprep.subr.msk.bf16.mxu0 %vm296_vm8, %v722_v61  ;;  %v1199_v9 = vunpack.i.h.bf16 %v1197_v5  ;;  %v1198_v10 = vunpack.i.l.bf16 %v1197_v5  ;;  %v804_v11 = vpack.c.bf16 %v800_v7, %v800_v7  ;;  %v803_v19 = vpack.c.bf16 %v799_v8, %v799_v8 }
  0xe4   : > { %1067 = vmatmul.mubr.msk.bf16.vlgmr.msra.gmra.mrb[4].mxu1 %vm1847_vm3, %v505_v36 }
  0xe5   : > { %654 = vmatpush1.bf16.msra.mxu1 %v648_v6  ;;  %685 = vmatprep.mubr.bf16.mxu1 %v1336_v0  ;;  %v865_v13 = vsel %vm864_vm2, %v1198_v10, %v1199_v9  ;;  %v866_v15 = vsel %vm864_vm2, %v1199_v9, %v1198_v10  ;;  %v812_v22 = vsel %vm296_vm8, %v803_v19, 0  ;;  %v725_v23 = vpop.permute.xlu0 %724 }
  0xe6   : > { %1074 = vmatprep.subr.msk.bf16.mxu1 %vm296_vm8, %v804_v11  ;;  %v882_v17 = vsel %vm880_vm4, %v866_v15, 0.0  ;;  %v881_v21 = vsel %vm879_vm10, %v865_v13, 0.0  ;;  %v889_v27 = vpop.permute.xlu1 %888 }
  0xe7   : > { %v886_v20 = vpack.c.bf16 %v882_v17, %v882_v17  ;;  %v885_v24 = vpack.c.bf16 %v881_v21, %v881_v21 }
  0xe9   : > { %1069 = vmatmul.mubr.msk.bf16.vlgmr.msra.gmra.mrb[8].mxu0 %vm1848_vm6, %v561_v56  ;;  %v894_v25 = vsel %vm296_vm8, %v885_v24, 0  ;;  %v807_v26 = vpop.permute.xlu0 %806 }
  0xea   : > { %736 = vmatpush1.bf16.msra.mxu0 %v730_v18  ;;  %767 = vmatprep.mubr.bf16.mxu0 %v1336_v0 }
  0xeb   : > { %1076 = vmatprep.subr.msk.bf16.mxu0 %vm296_vm8, %v886_v20 }
  0xec   : > { %1071 = vmatmul.mubr.msk.bf16.vlgmr.msra.gmra.mrb[8].mxu1 %vm1849_vm5, %v643_v12 }
  0xed   : > { %818 = vmatpush1.bf16.msra.mxu1 %v812_v22  ;;  %849 = vmatprep.mubr.bf16.mxu1 %v1336_v0 }
  0xf1   : > { %1073 = vmatmul.mubr.msk.bf16.vlgmr.msra.gmra.mrb[12].mxu0 %vm1850_vm7, %v725_v23 }
  0xf2   : > { %900 = vmatpush1.bf16.msra.mxu0 %v894_v25  ;;  %931 = vmatprep.mubr.bf16.mxu0 %v1336_v0 }
  0xf4   : > { %1075 = vmatmul.mubr.msk.bf16.vlgmr.msra.gmra.mrb[12].mxu1 %vm1851_vm9, %v807_v26 }
  0xf9   : > { %1077 = vmatmul.mubr.msk.bf16.vlgmr.msra.gmra.mrb[16].mxu0 %vm1852_vm11, %v889_v27 }
  0xfa   : > { %v946_v9 = vpop.permute.xlu0 %945 }
 0x1ac   : > { %v337_v28 = vpop.f32.mrb[0].mxu0 }
 0x1ad   : > { %v339_v29 = vpop.f32.mrb[1].mxu0 }
 0x1ae   : > { %v341_v31 = vpop.f32.mrb[2].mxu0 }
 0x1af   : > { %v342_v32 = vpop.f32.mrb[3].mxu0  ;;  %v387_v33 = vpop.f32.mrb[0].mxu1 }
 0x1b0   : > { %v388_v34 = vadd.f32 %v387_v33, %v337_v28  ;;  %v389_v35 = vpop.f32.mrb[1].mxu1 }
 0x1b1   : > { %v390_v36 = vadd.f32 %v389_v35, %v339_v29  ;;  %v391_v37 = vpop.f32.mrb[2].mxu1 }
 0x1b2   : > { %v392_v38 = vpop.f32.mrb[3].mxu1 }
 0x1b4   : > { %v467_v39 = vpop.f32.mrb[4].mxu0 }
 0x1b5   : > { %v474_v40 = vadd.f32 %v467_v39, %v388_v34  ;;  %v469_v30 = vpop.f32.mrb[5].mxu0 }
 0x1b6   : > { %v475_v41 = vadd.f32 %v469_v30, %v390_v36  ;;  %v471_v0 = vpop.f32.mrb[6].mxu0 }
 0x1b7   : > { %v472_v42 = vpop.f32.mrb[7].mxu0  ;;  %v549_v43 = vpop.f32.mrb[4].mxu1 }
 0x1b8   : > { %v556_v44 = vadd.f32 %v549_v43, %v474_v40  ;;  %v551_v45 = vpop.f32.mrb[5].mxu1 }
 0x1b9   : > { %v557_v47 = vadd.f32 %v551_v45, %v475_v41  ;;  %v553_v49 = vpop.f32.mrb[6].mxu1 }
 0x1ba   : > { %v554_v50 = vpop.f32.mrb[7].mxu1 }
 0x1bc   : > { %v605_v4 = vpop.f32.mrb[8].mxu0 }
 0x1bd   : > { %v612_v46 = vadd.f32 %v605_v4, %v556_v44  ;;  %v607_v51 = vpop.f32.mrb[9].mxu0 }
 0x1be   : > { %v613_v3 = vadd.f32 %v607_v51, %v557_v47  ;;  %v609_v52 = vpop.f32.mrb[10].mxu0 }
 0x1bf   : > { %v610_v53 = vpop.f32.mrb[11].mxu0  ;;  %v687_v54 = vpop.f32.mrb[8].mxu1 }
 0x1c0   : > { %v694_v2 = vadd.f32 %v687_v54, %v612_v46  ;;  %v689_v48 = vpop.f32.mrb[9].mxu1 }
 0x1c1   : > { %v695_v55 = vadd.f32 %v689_v48, %v613_v3  ;;  %v691_v56 = vpop.f32.mrb[10].mxu1 }
 0x1c2   : > { %v692_v57 = vpop.f32.mrb[11].mxu1 }
 0x1c4   : > { %v769_v58 = vpop.f32.mrb[12].mxu0 }
 0x1c5   : > { %v776_v59 = vadd.f32 %v769_v58, %v694_v2  ;;  %v771_v60 = vpop.f32.mrb[13].mxu0 }
 0x1c6   : > { %v777_v61 = vadd.f32 %v771_v60, %v695_v55  ;;  %v773_v62 = vpop.f32.mrb[14].mxu0 }
 0x1c7   : > { %v774_v63 = vpop.f32.mrb[15].mxu0  ;;  %v851_v1 = vpop.f32.mrb[12].mxu1 }
 0x1c8   : > { %v858_v14 = vadd.f32 %v851_v1, %v776_v59  ;;  %v853_v6 = vpop.f32.mrb[13].mxu1 }
 0x1c9   : > { %v859_v7 = vadd.f32 %v853_v6, %v777_v61  ;;  %v855_v5 = vpop.f32.mrb[14].mxu1 }
 0x1ca   : > { %v856_v16 = vpop.f32.mrb[15].mxu1 }
 0x1cc   : > { %v933_v8 = vpop.f32.mrb[16].mxu0 }
 0x1cd   : > { %v940_v10 = vadd.f32 %v933_v8, %v858_v14  ;;  %v935_v11 = vpop.f32.mrb[17].mxu0 }
 0x1ce   : > { %v941_v12 = vadd.f32 %v935_v11, %v859_v7  ;;  %v937_v13 = vpop.f32.mrb[18].mxu0 }
 0x1cf   : > { %v948_v15 = vadd.f32 %v946_v9, %v940_v10  ;;  %v938_v19 = vpop.f32.mrb[19].mxu0 }
 0x1d0   : > { %v949_v17 = vadd.f32 %v946_v9, %v941_v12 }
 0x1d1   : > { %v950_v18 = vmax.f32 %v948_v15, 0.0 }
 0x1d2   : > { %v951_v20 = vmax.f32 %v949_v17, 0.0 }
 0x1d3   : > { %952 = vst [vmem:[%s228_s10] sm:$0xff] %v950_v18 }
 0x1d4   : > { %953 = vst [vmem:[%s228_s10 + $0x8] sm:$0xff] %v951_v20 }
 0x1d5   : > { %1273 = shalt.err (!%p1270_p7)
}
 0x1d6   : > { %s1274_s25 = scalar_lea.hbm %s1756_s5, 256  ;;  %s1278_s23 = scalar_lea.hbm %s1803_s4, 1024 }
 0x1d7   : > { %p1275_p9 = scmp.ne.s32.totalorder %s1756_s5, %s1274_s25  ;;  %p1279_p0 = scmp.lt.u32.totalorder %s1756_s5, %s1803_s4 }
 0x1d8   : > { %p1280_p2 = scmp.lt.u32.totalorder %s1278_s23, %s1274_s25  ;;  %p1282_p1 = scmp.lt.u32.totalorder %s1274_s25, %s1756_s5 }
 0x1d9   : > { %p1276_p11 = pnand %p1275_p9, %p1461_p12 }
 0x1da   : > { %p1281_p10 = por %p1280_p2, %p1279_p0 }
 0x1db   : > { %p1277_p5 = pneg %p1276_p11 }
 0x1dc   : > { %p1283_p4 = por %p1282_p1, %p1281_p10 }
 0x1de   : > { %p1284_p6 = pnand %p1283_p4, %p1277_p5 }
 0x1e0   : > { %1287 = shalt.err (!%p1284_p6)
}
 0x1e1   : > { %1091 = dma.vmem_to_hbm [thread:$0]  (%p1461_p12), %s1758_s14, 256, %s1756_s5, %s955_s7  }
 0x1e2 PF: > { %p1108_p8 = scmp.ge.s32.totalorder %s1330_s18, 2  ;;  %s981_s28 = sand.u32 1, %s1318_s15  }
 0x1e3   : > { %p1853_p13 = scmp.ne.s32.totalorder %s1808_s22, 0  ;;  %s982_s29 = scalar_lea.sflag [#allocation4], %s981_s28 }
 0x1e5   : > { %p1102_p3 = pnand %p1108_p8, %p1853_p13 }
 0x1e7   : > { %1313 = dma.done.wait (!%p1102_p3), %s982_s29, 256  }
 0x1e8   : > { %1315 = vsyncadd (!%p1102_p3), %s982_s29, 4294967040  ;;  %p18_p7 = scmp.ge.s32.totalorder %s1431_s27, 6   ;;  %s1854_s15 = smov %s1322_s16 }
 0x1e9   : > { %s1855_s16 = smov %s1326_s17  ;;  %s1856_s17 = smov %s1457_s24 }
 0x1ea   : > { %s1857_s18 = smov %s1431_s27  ;;  %20 = sbr.rel (!%p18_p7) target bundleno = 6 (0x6), region = 92 }
 0x1f1   :  { %987 = vsyncpa [#allocation3], 1 }
 0x1f2   :  { %989 = vsyncpa [#allocation3 + $0x1], 1 }
 0x1f3   :  { %990 = vsyncpa [#allocation6], 1 }
 0x1f4   :  { %991 = vsyncpa [#allocation4], 1 }
 0x1f5   :  { %993 = vsyncpa [#allocation4 + $0x1], 1 }

</bundles_post_ra>
